<compile_context>
chip_gen: v5e
topology: v5e:2x2
jax: 0.10.0
libtpu: 0.0.40
codegen_flags: <defaults>
</compile_context>

<pallas_src>
import jax
import jax.numpy as jnp
import numpy as np
from jax import lax
from jax.experimental import pallas as pl
from jax.experimental.pallas import tpu as pltpu


def _round_up(n: int, m: int) -> int:
    return ((n + m - 1) // m) * m


def linear_layer_kernel(idx_ref, table_ref, bias_ref, out_ref):
    # idx_ref:   VMEM (F, block_b) int32  -- offset-adjusted indices, batch on lanes
    # table_ref: VMEM (V, D) f32          -- whole table, resident (not pipelined)
    # bias_ref:  VMEM (D, 1) f32          -- resident
    # out_ref:   VMEM (D, block_b) f32    -- lane-dense output tile (batch on lanes)
    num_fields, block_b = idx_ref.shape
    vocab, out_dim = table_ref.shape

    idx = idx_ref[...]                                             # (F, block_b)
    iota_v = lax.broadcasted_iota(jnp.int32, (vocab, block_b), 0)  # (V, block_b)

    # counts[v, b] = number of fields whose index equals v (0/1 here since field
    # ranges are disjoint; the formulation stays correct even if they were not).
    counts = jnp.zeros((vocab, block_b), jnp.float32)
    for f in range(num_fields):                                    # static, small F
        counts = counts + (iota_v == idx[f:f + 1, :]).astype(jnp.float32)

    table = table_ref[...]                                         # (V, D) f32
    cols = []
    for d in range(out_dim):                                       # static, usually D == 1
        col = table[:, d:d + 1]                                    # (V, 1), lane-broadcast
        cols.append(jnp.sum(counts * col, axis=0, keepdims=True))  # (1, block_b)
    acc = cols[0] if out_dim == 1 else jnp.concatenate(cols, axis=0)   # (D, block_b)

    out_ref[...] = acc + bias_ref[...]                             # ONE full-tile, lane-dense store


def linear_layer_forward(x, offsets, table, bias, *, block_b=512):
    """x: (B, F) int, offsets: (F,) int, table: (V, D) f32, bias: (D,) f32 -> (B, D)."""
    B, F = x.shape
    V, D = table.shape

    # Large, lane-aligned batch tiles (amortize ~0.35us/grid-step; lane-dense stores).
    block_b = max(128, min(_round_up(block_b, 128), _round_up(B, 128)))
    B_pad = _round_up(B, block_b)
    nb = B_pad // block_b

    # Pre-add offsets; transpose so batch is the lane (minor) axis; pad with index 0
    # (padded rows are computed then dropped -> no per-row guards in the kernel).
    idx = x.astype(jnp.int32) + offsets.astype(jnp.int32)[None, :]     # (B, F)
    idx_t = jnp.pad(idx.T, ((0, 0), (0, B_pad - B)))                   # (F, B_pad)

    table_f32 = table.astype(jnp.float32)
    bias_col = bias.astype(jnp.float32).reshape(D, 1)

    # Explicit VMEM budget: resident (lane-padded) table + double-buffered idx/out tiles,
    # with headroom; capped well under the v7x 64 MiB ceiling (also fine on v5e/v6e).
    resident = _round_up(V, 8) * _round_up(D, 128) * 4
    tiles = 2 * (_round_up(F, 8) + _round_up(D, 8)) * block_b * 4
    vmem_limit = int(min(max(2 * (resident + tiles) + (4 << 20), 16 << 20), 48 << 20))

    out_t = pl.pallas_call(
        linear_layer_kernel,
        out_shape=jax.ShapeDtypeStruct((D, B_pad), jnp.float32),
        grid=(nb,),
        in_specs=[
            pl.BlockSpec((F, block_b), lambda i: (0, i)),          # idx tile (pipelined)
            pl.BlockSpec(memory_space=pltpu.MemorySpace.VMEM),     # table: whole-array resident
            pl.BlockSpec(memory_space=pltpu.MemorySpace.VMEM),     # bias:  whole-array resident
        ],
        out_specs=pl.BlockSpec((D, block_b), lambda i: (0, i)),    # lane-dense (batch on lanes)
        compiler_params=pltpu.CompilerParams(
            dimension_semantics=("parallel",),     # v7x: batch tiles split across both TCs
            vmem_limit_bytes=vmem_limit,
        ),
    )(idx_t, table_f32, bias_col)

    return out_t.T[:B]                                              # (B, D)


if __name__ == "__main__":
    # Small, deterministic configuration consistent with the module.
    field_dims = (3, 5, 7, 11)            # num_fields = 4, vocab = 26
    output_dim = 1
    batch = 16

    num_fields = len(field_dims)
    vocab = int(sum(field_dims))
    offsets = jnp.asarray((0, *np.cumsum(field_dims)[:-1]), dtype=jnp.int32)   # (F,)

    key = jax.random.PRNGKey(0)
    k_tab, k_x = jax.random.split(key)

    # Xavier-uniform init of the embedding table.
    bound = float(np.sqrt(6.0 / (vocab + output_dim)))
    table = jax.random.uniform(k_tab, (vocab, output_dim), dtype=jnp.float32,
                               minval=-bound, maxval=bound)
    bias = jnp.zeros((output_dim,), dtype=jnp.float32)

    # Random valid indices per field (each in [0, field_dims[f])).
    maxes = jnp.asarray(field_dims, dtype=jnp.float32)[None, :]
    u = jax.random.uniform(k_x, (batch, num_fields))
    x = jnp.floor(u * maxes).astype(jnp.int32)                # (B, F)

    out = linear_layer_forward(x, offsets, table, bias)
    out = jax.block_until_ready(out)

    # Pure-JAX reference (gather + sum + bias).
    idx_full = x + offsets[None, :]
    ref = jnp.sum(table[idx_full], axis=1) + bias[None, :]
    assert out.shape == (batch, output_dim)
    np.testing.assert_allclose(np.asarray(out), np.asarray(ref),
                               rtol=1e-5, atol=1e-6)

    print("KERNEL_OK")
</pallas_src>

<mosaic_0001>
module attributes {stable_mosaic.version = 11 : i64} {
  func.func @linear_layer_kernel(%arg0: i32, %arg1: memref<4x128xi32, #tpu.memory_space<vmem>>, %arg2: memref<26x1xf32, #tpu.memory_space<vmem>>, %arg3: memref<1x1xf32, #tpu.memory_space<vmem>>, %arg4: memref<1x128xf32, #tpu.memory_space<vmem>>) attributes {dimension_semantics = [#tpu.dimension_semantics<parallel>], iteration_bounds = array<i64: 1>, scalar_prefetch = 0 : i64, scratch_operands = 0 : i64, tpu.core_type = #tpu.core_type<tc>, window_params = [{transform_indices = @transform_0, window_bounds = array<i64: 4, 128>}, {pipeline_mode = #tpu.pipeline_mode<synchronous>, transform_indices = @transform_1, window_bounds = array<i64: 26, 1>}, {pipeline_mode = #tpu.pipeline_mode<synchronous>, transform_indices = @transform_2, window_bounds = array<i64: 1, 1>}, {transform_indices = @transform_3, window_bounds = array<i64: 1, 128>}]} {
    %c0 = arith.constant 0 : index
    %c0_0 = arith.constant 0 : index
    %0 = vector.load %arg1[%c0, %c0_0] : memref<4x128xi32, #tpu.memory_space<vmem>>, vector<4x128xi32>
    %1 = tpu.iota {dimensions = array<i32: 0>} : vector<26x128xi32>
    %cst = arith.constant 0.000000e+00 : f32
    %2 = vector.broadcast %cst : f32 to vector<26x128xf32>
    %3 = vector.extract_strided_slice %0 {offsets = [0, 0], sizes = [1, 128], strides = [1, 1]} : vector<4x128xi32> to vector<1x128xi32>
    %4 = vector.broadcast %3 : vector<1x128xi32> to vector<26x128xi32>
    %5 = arith.cmpi eq, %1, %4 : vector<26x128xi32>
    %6 = arith.extui %5 : vector<26x128xi1> to vector<26x128xi32>
    %7 = arith.sitofp %6 : vector<26x128xi32> to vector<26x128xf32>
    %8 = arith.addf %2, %7 : vector<26x128xf32>
    %9 = vector.extract_strided_slice %0 {offsets = [1, 0], sizes = [1, 128], strides = [1, 1]} : vector<4x128xi32> to vector<1x128xi32>
    %10 = vector.broadcast %9 : vector<1x128xi32> to vector<26x128xi32>
    %11 = arith.cmpi eq, %1, %10 : vector<26x128xi32>
    %12 = arith.extui %11 : vector<26x128xi1> to vector<26x128xi32>
    %13 = arith.sitofp %12 : vector<26x128xi32> to vector<26x128xf32>
    %14 = arith.addf %8, %13 : vector<26x128xf32>
    %15 = vector.extract_strided_slice %0 {offsets = [2, 0], sizes = [1, 128], strides = [1, 1]} : vector<4x128xi32> to vector<1x128xi32>
    %16 = vector.broadcast %15 : vector<1x128xi32> to vector<26x128xi32>
    %17 = arith.cmpi eq, %1, %16 : vector<26x128xi32>
    %18 = arith.extui %17 : vector<26x128xi1> to vector<26x128xi32>
    %19 = arith.sitofp %18 : vector<26x128xi32> to vector<26x128xf32>
    %20 = arith.addf %14, %19 : vector<26x128xf32>
    %21 = vector.extract_strided_slice %0 {offsets = [3, 0], sizes = [1, 128], strides = [1, 1]} : vector<4x128xi32> to vector<1x128xi32>
    %22 = vector.broadcast %21 : vector<1x128xi32> to vector<26x128xi32>
    %23 = arith.cmpi eq, %1, %22 : vector<26x128xi32>
    %24 = arith.extui %23 : vector<26x128xi1> to vector<26x128xi32>
    %25 = arith.sitofp %24 : vector<26x128xi32> to vector<26x128xf32>
    %26 = arith.addf %20, %25 : vector<26x128xf32>
    %c0_1 = arith.constant 0 : index
    %c0_2 = arith.constant 0 : index
    %27 = vector.load %arg2[%c0_1, %c0_2] : memref<26x1xf32, #tpu.memory_space<vmem>>, vector<26x1xf32>
    %28 = vector.broadcast %27 : vector<26x1xf32> to vector<26x128xf32>
    %29 = arith.mulf %26, %28 : vector<26x128xf32>
    %cst_3 = arith.constant dense<0.000000e+00> : vector<128xf32>
    %30 = vector.multi_reduction <add>, %29, %cst_3 [0] : vector<26x128xf32> to vector<128xf32>
    %31 = vector.shape_cast %30 : vector<128xf32> to vector<1x128xf32>
    %c0_4 = arith.constant 0 : index
    %c0_5 = arith.constant 0 : index
    %32 = vector.load %arg3[%c0_4, %c0_5] : memref<1x1xf32, #tpu.memory_space<vmem>>, vector<1x1xf32>
    %33 = vector.broadcast %32 : vector<1x1xf32> to vector<1x128xf32>
    %34 = arith.addf %31, %33 : vector<1x128xf32>
    %c0_6 = arith.constant 0 : index
    %c0_7 = arith.constant 0 : index
    %35 = vector.load %arg4[%c0_6, %c0_7] : memref<1x128xf32, #tpu.memory_space<vmem>>, vector<1x128xf32>
    tpu.vector_store %arg4[%c0_6, %c0_7], %34 {strides = array<i32>} : memref<1x128xf32, #tpu.memory_space<vmem>>, vector<1x128xf32>,
    return
  }
  func.func @transform_0(%arg0: i32) -> (i32, i32) {
    %c0_i32 = arith.constant 0 : i32
    %c0_i32_0 = arith.constant 0 : i32
    return %c0_i32, %arg0 : i32, i32
  }
  func.func @transform_1(%arg0: i32) -> (i32, i32) {
    %c0_i32 = arith.constant 0 : i32
    %c0_i32_0 = arith.constant 0 : i32
    %c0_i32_1 = arith.constant 0 : i32
    return %c0_i32, %c0_i32_0 : i32, i32
  }
  func.func @transform_2(%arg0: i32) -> (i32, i32) {
    %c0_i32 = arith.constant 0 : i32
    %c0_i32_0 = arith.constant 0 : i32
    %c0_i32_1 = arith.constant 0 : i32
    return %c0_i32, %c0_i32_0 : i32, i32
  }
  func.func @transform_3(%arg0: i32) -> (i32, i32) {
    %c0_i32 = arith.constant 0 : i32
    %c0_i32_0 = arith.constant 0 : i32
    return %c0_i32, %arg0 : i32, i32
  }
}

</mosaic_0001>

<bundles_post_ra>
// kernel: tpu_custom_call.1
= control target key start
LH: loop header
LB: loop body
LE: loop exit
PB: predicated region body
PF: predicated region fallthrough
CT: control target
= control target key end

     0   :  { %s247_s0 = inlined_call_operand.vmem [shape: s32[4,128], index: 0, kind: input, shape index: {}]   ;;  %s248_s1 = inlined_call_operand.vmem [shape: f32[26,1], index: 1, kind: input, shape index: {}]   ;;  %s249_s2 = inlined_call_operand.<no memory space> [shape: f32[1,1], index: 2, kind: input, shape index: {}]   ;;  %s250_s3 = inlined_call_operand.hbm [shape: f32[1,128], index: 3, kind: output, shape index: {}]  }
   0x1   :  { %v8_v0 = vstv %s249_s2 }
   0x2   :  { %9 = vst [vmem:[#allocation2] sm:$0x1] %v8_v0 }
   0x3   :  { %v93_v1 = vld [vmem:[%s248_s1 + $0x10] sm:$0xff]  ;;  %v91_v2 = vld [vmem:[%s248_s1] sm:$0xff]  ;;  %v203_v3 = vmov 0  }
   0x4   :  { %175 = vset.pattern.permute.xlu1 %v203_v3  ;;  %174 = vset.pattern.permute.xlu0 %v203_v3 }
   0x9   :  { %v130_v4 = vld [vmem:[#allocation2] sm:$0x1] }
   0xa   :  { %10 = vsyncpa [#allocation4], 0  ;;  %107 = vperm.xlu1 %175, %v93_v1   ;;  %97 = vperm.xlu0 %174, %v91_v2   ;;  %v94_v5 = vld [vmem:[%s248_s1 + $0x18] sm:$0x3]  ;;  %v92_v6 = vld [vmem:[%s248_s1 + $0x8] sm:$0xff]  ;;  %v18_v7 = vlaneseq  ;;  %v204_v16 = vmov 0.0  }
   0xb   :  { %176 = vset.pattern.permute.xlu2 %v203_v3  ;;  %v17_v8 = vld [vmem:[%s247_s0] sm:$0xf]  ;;  %s205_s0 = smov [#allocation3]   ;;  %s146_s25 = sshll.u32 %s250_s3, 4  ;;  %s147_s25 = int_to_ptr.hbm [resolvable:$true] %s146_s25 }
   0xc   :  { %133 = vperm.xlu2 %176, %v130_v4   ;;  %v19_v9 = vshrl.u32 %v18_v7, 7  ;;  %v23_v10 = vperm.slane %v17_v8, 0  ;;  %v40_v11 = vperm.slane %v17_v8, 1  ;;  %v57_v15 = vperm.slane %v17_v8, 2  ;;  %s144_s1 = sshll.u32 %s205_s0, 4  ;;  %s145_s1 = int_to_ptr.vmem [resolvable:$true] %s144_s1 }
   0xd   :  { %v74_v18 = vperm.slane %v17_v8, 3 }
   0xe   :  { %v20_v12 = vadd.s32 8, %v19_v9  ;;  %v22_v13 = vadd.s32 24, %v19_v9  ;;  %v21_v14 = vadd.s32 16, %v19_v9  ;;  %vm24_vm0 = vcmp.eq.s32.totalorder %v19_v9, %v23_v10 }
   0xf   :  { %vm41_vm1 = vcmp.eq.s32.totalorder %v19_v9, %v40_v11  ;;  %v155_v17 = vsel %vm24_vm0, 1.0, %v204_v16  ;;  %vm58_vm8 = vcmp.eq.s32.totalorder %v19_v9, %v57_v15  ;;  %vm75_vm12 = vcmp.eq.s32.totalorder %v19_v9, %v74_v18 }
  0x10   :  { %vm25_vm2 = vcmp.eq.s32.totalorder %v20_v12, %v23_v10  ;;  %vm42_vm3 = vcmp.eq.s32.totalorder %v20_v12, %v40_v11  ;;  %vm27_vm4 = vcmp.eq.s32.totalorder %v22_v13, %v23_v10  ;;  %vm44_vm5 = vcmp.eq.s32.totalorder %v22_v13, %v40_v11 }
  0x11   :  { %vm26_vm6 = vcmp.eq.s32.totalorder %v21_v14, %v23_v10  ;;  %vm43_vm7 = vcmp.eq.s32.totalorder %v21_v14, %v40_v11  ;;  %v159_v19 = vsel %vm41_vm1, 1.0, %v204_v16  ;;  %v156_v20 = vsel %vm25_vm2, 1.0, %v204_v16 }
  0x12   :  { %112 = vperm.xlu1 %175, %v94_v5   ;;  %102 = vperm.xlu0 %174, %v92_v6   ;;  %v160_v21 = vsel %vm42_vm3, 1.0, %v204_v16  ;;  %v158_v22 = vsel %vm27_vm4, 1.0, %v204_v16  ;;  %v162_v23 = vsel %vm44_vm5, 1.0, %v204_v16  ;;  %vm59_vm9 = vcmp.eq.s32.totalorder %v20_v12, %v57_v15 }
  0x13   :  { %v157_v24 = vsel %vm26_vm6, 1.0, %v204_v16  ;;  %v161_v25 = vsel %vm43_vm7, 1.0, %v204_v16  ;;  %vm61_vm10 = vcmp.eq.s32.totalorder %v22_v13, %v57_v15  ;;  %vm60_vm11 = vcmp.eq.s32.totalorder %v21_v14, %v57_v15 }
  0x14   :  { %v53_v26 = vadd.f32 %v159_v19, %v155_v17  ;;  %v54_v27 = vadd.f32 %v160_v21, %v156_v20  ;;  %v163_v28 = vsel %vm58_vm8, 1.0, %v204_v16  ;;  %v56_v29 = vadd.f32 %v162_v23, %v158_v22 }
  0x15   :  { %v164_v30 = vsel %vm59_vm9, 1.0, %v204_v16  ;;  %v55_v31 = vadd.f32 %v161_v25, %v157_v24  ;;  %v166_v32 = vsel %vm61_vm10, 1.0, %v204_v16  ;;  %vm76_vm13 = vcmp.eq.s32.totalorder %v20_v12, %v74_v18 }
  0x16   :  { %v165_v34 = vsel %vm60_vm11, 1.0, %v204_v16  ;;  %vm78_vm14 = vcmp.eq.s32.totalorder %v22_v13, %v74_v18  ;;  %vm77_vm15 = vcmp.eq.s32.totalorder %v21_v14, %v74_v18  ;;  %v70_v36 = vadd.f32 %v163_v28, %v53_v26 }
  0x17   :  { %v71_v37 = vadd.f32 %v164_v30, %v54_v27  ;;  %v167_v38 = vsel %vm75_vm12, 1.0, %v204_v16  ;;  %v73_v39 = vadd.f32 %v166_v32, %v56_v29  ;;  %v168_v40 = vsel %vm76_vm13, 1.0, %v204_v16 }
  0x18   :  { %v72_v41 = vadd.f32 %v165_v34, %v55_v31  ;;  %v170_v42 = vsel %vm78_vm14, 1.0, %v204_v16  ;;  %v169_v43 = vsel %vm77_vm15, 1.0, %v204_v16  ;;  %v87_v44 = vadd.f32 %v167_v38, %v70_v36 }
  0x19   :  { %v88_v45 = vadd.f32 %v168_v40, %v71_v37  ;;  %v90_v46 = vadd.f32 %v170_v42, %v73_v39  ;;  %vm121_vm0 = vcmask 1041408  }
  0x1a   :  { %v89_v47 = vadd.f32 %v169_v43, %v72_v41 }
  0x66   :  { %v134_v61 = vpop.permute.xlu2 %133 }
  0x67   :  { %v136_v0 = vperm.slane %v134_v61, 0 }
  0x7c   :  { %v108_v33 = vpop.permute.xlu1 %107  ;;  %v98_v35 = vpop.permute.xlu0 %97 }
  0x7d   :  { %v115_v50 = vmul.f32 %v98_v35, %v87_v44  ;;  %v117_v53 = vmul.f32 %v108_v33, %v89_v47 }
  0x84   :  { %v113_v48 = vpop.permute.xlu1 %112  ;;  %v103_v49 = vpop.permute.xlu0 %102 }
  0x85   :  { %v116_v51 = vmul.f32 %v103_v49, %v88_v45  ;;  %v118_v52 = vmul.f32 %v113_v48, %v90_v46 }
  0x87   :  { %v119_v54 = vadd.f32 %v116_v51, %v115_v50  ;;  %v122_v56 = vsel %vm121_vm0, %v118_v52, 0.0 }
  0x89   :  { %v120_v55 = vadd.f32 %v119_v54, %v117_v53 }
  0x8b   :  { %v123_v57 = vadd.f32 %v122_v56, %v120_v55 }
  0x8d   :  { %v124_v58 = vrot.slane %v123_v57, 4 }
  0x8f   :  { %v125_v59 = vadd.f32 %v124_v58, %v123_v57 }
  0x91   :  { %v126_v60 = vrot.slane %v125_v59, 2 }
  0x93   :  { %v127_v62 = vadd.f32 %v126_v60, %v125_v59 }
  0x95   :  { %v128_v63 = vrot.slane %v127_v62, 1 }
  0x97   :  { %v129_v1 = vadd.f32 %v128_v63, %v127_v62 }
  0x99   :  { %v137_v2 = vadd.f32 %v136_v0, %v129_v1 }
  0x9b   :  { %138 = vst [vmem:[#allocation3] sm:$0x1] %v137_v2 }
  0x9c   :  { %149 = dma.vmem_to_hbm [thread:$0]  %s145_s1, 16, %s147_s25, [#allocation4]  }
  0x9d   :  { %201 = dma.done.wait [#allocation4], 16  }
  0x9e   :  { %202 = vsyncadd [#allocation4], 4294967280 }
  0x9f   :  { %154 = vsyncpa [#allocation4], 1 }

</bundles_post_ra>
